<compile_context>
chip_gen: v5e
topology: v5e:2x2
jax: 0.10.0
libtpu: 0.0.40
codegen_flags: <defaults>
</compile_context>

<pallas_src>
import math

import jax
import jax.numpy as jnp
from jax.experimental import pallas as pl
from jax.experimental.pallas import tpu as pltpu

# ---------------- config (matches the module defaults) ----------------
B = 8              # batch (>=2 so batch statistics are well defined)
IN_DIM = 4         # input_dim
HID = 64           # hidden_dim
OUT_DIM = 1        # output_dim
BN_EPS = 1e-5

# ---------------- packed-parameter row layout ----------------
_ROW_W1 = 0                   # rows [0, IN_DIM): W1 (one row per input feature)
_ROW_B1 = IN_DIM              # fc1 bias
_ROW_W2 = IN_DIM + 1          # BN-affine-folded fc2 weight, stored as a row
_ROW_B2 = IN_DIM + 2          # BN-affine-folded fc2 bias, in lane 0
_N_ROWS = 8                   # padded to a full sublane group


# ---------------- fused Pallas kernel ----------------
def hybrid_head_kernel(x_ref, p_ref, o_ref):
    x = x_ref[...]                                                  # [B, IN_DIM]

    # fc1 + bias: unrolled K=IN_DIM outer-product FMA on the VPU
    # (avoids a degenerate K=4 MXU matmul; bias folded as accumulator init).
    h = jnp.broadcast_to(p_ref[_ROW_B1:_ROW_B1 + 1, :], (B, HID))   # [B, HID]
    for k in range(IN_DIM):                                         # static unroll
        h = h + x[:, k:k + 1] * p_ref[_ROW_W1 + k:_ROW_W1 + k + 1, :]

    # ReLU
    h = jnp.maximum(h, 0.0)

    # dropout: identity (see TODO at top of file)

    # BatchNorm1d with batch statistics, single-pass variance
    mu = jnp.mean(h, axis=0, keepdims=True)                         # [1, HID]
    var = jnp.mean(h * h, axis=0, keepdims=True) - mu * mu          # [1, HID]
    h = (h - mu) * jax.lax.rsqrt(var + BN_EPS)                      # rsqrt -> EUP
    # (gamma/beta folded into the packed fc2 rows)

    # fc2 (N=1): VPU multiply + lane (XLU) reduction instead of an MXU matmul
    w2_row = p_ref[_ROW_W2:_ROW_W2 + 1, :]                          # [1, HID]
    b2 = p_ref[_ROW_B2:_ROW_B2 + 1, 0:1]                            # [1, 1]
    o_ref[...] = jnp.sum(h * w2_row, axis=-1, keepdims=True) + b2   # [B, 1]


# ---------------- parameter packing (fold BN affine into fc2) ----------------
def pack_params(w1, b1, gamma, beta, w2, b2):
    assert OUT_DIM == 1, "row-packed fc2 assumes output_dim == 1"
    # (h_norm * gamma + beta) @ W2 + b2  ==  h_norm @ (gamma[:,None]*W2) + (beta@W2 + b2)
    w2_f = w2 * gamma.reshape(-1, 1)                      # [HID, OUT_DIM]
    b2_f = b2.reshape(1, -1) + beta.reshape(1, -1) @ w2   # [1, OUT_DIM]

    p = jnp.zeros((_N_ROWS, HID), jnp.float32)
    p = p.at[_ROW_W1:_ROW_W1 + IN_DIM, :].set(w1)
    p = p.at[_ROW_B1, :].set(b1.reshape(-1))
    p = p.at[_ROW_W2, :].set(w2_f.reshape(-1))
    p = p.at[_ROW_B2, 0].set(b2_f[0, 0])
    return p


def hybrid_prediction_head(x, w1, b1, gamma, beta, w2, b2):
    params = pack_params(w1, b1, gamma, beta, w2, b2)

    # advisory cost hint for XLA scheduling around this tiny custom call
    flops = 2 * B * IN_DIM * HID + 8 * B * HID + 2 * B * HID * OUT_DIM
    bytes_accessed = (x.size + params.size + B * OUT_DIM) * 4
    cost = pl.CostEstimate(flops=flops, transcendentals=HID,
                           bytes_accessed=bytes_accessed)

    fn = pl.pallas_call(
        hybrid_head_kernel,
        out_shape=jax.ShapeDtypeStruct((B, OUT_DIM), jnp.float32),
        in_specs=[pl.BlockSpec(memory_space=pltpu.MemorySpace.VMEM),
                  pl.BlockSpec(memory_space=pltpu.MemorySpace.VMEM)],
        out_specs=pl.BlockSpec(memory_space=pltpu.MemorySpace.VMEM),
        cost_estimate=cost,
    )
    return fn(x, params)


# ---------------- parameter init (PyTorch Linear / BatchNorm defaults) ----------------
def init_params(key):
    k1, k2, k3, k4 = jax.random.split(key, 4)
    bound1 = 1.0 / math.sqrt(IN_DIM)
    bound2 = 1.0 / math.sqrt(HID)
    w1 = jax.random.uniform(k1, (IN_DIM, HID), jnp.float32, -bound1, bound1)
    b1 = jax.random.uniform(k2, (1, HID), jnp.float32, -bound1, bound1)
    w2 = jax.random.uniform(k3, (HID, OUT_DIM), jnp.float32, -bound2, bound2)
    b2 = jax.random.uniform(k4, (1, OUT_DIM), jnp.float32, -bound2, bound2)
    gamma = jnp.ones((1, HID), jnp.float32)   # BatchNorm1d default weight
    beta = jnp.zeros((1, HID), jnp.float32)   # BatchNorm1d default bias
    return w1, b1, gamma, beta, w2, b2


# ---------------- pure-JAX reference for correctness ----------------
def reference_forward(x, w1, b1, gamma, beta, w2, b2):
    h = jnp.maximum(x @ w1 + b1, 0.0)
    mu = jnp.mean(h, axis=0, keepdims=True)
    var = jnp.mean(jnp.square(h - mu), axis=0, keepdims=True)
    h = (h - mu) / jnp.sqrt(var + BN_EPS) * gamma + beta
    return h @ w2 + b2


# ---------------- main ----------------
if __name__ == "__main__":
    root = jax.random.PRNGKey(0)
    k_param, k_x = jax.random.split(root, 2)

    w1, b1, gamma, beta, w2, b2 = init_params(k_param)
    x = jax.random.normal(k_x, (B, IN_DIM), dtype=jnp.float32)

    out = hybrid_prediction_head(x, w1, b1, gamma, beta, w2, b2)
    jax.block_until_ready(out)

    ref = reference_forward(x, w1, b1, gamma, beta, w2, b2)

    assert out.shape == (B, OUT_DIM)
    assert bool(jnp.all(jnp.isfinite(out)))
    assert bool(jnp.allclose(out, ref, rtol=1e-4, atol=1e-4)), \
        f"max abs err {float(jnp.max(jnp.abs(out - ref)))}"
    print("KERNEL_OK")
</pallas_src>

<mosaic_0001>
module attributes {stable_mosaic.version = 11 : i64} {
  func.func @hybrid_head_kernel(%arg0: memref<8x4xf32, #tpu.memory_space<vmem>>, %arg1: memref<8x64xf32, #tpu.memory_space<vmem>>, %arg2: memref<8x1xf32, #tpu.memory_space<vmem>>) attributes {dimension_semantics = [], scalar_prefetch = 0 : i64, scratch_operands = 0 : i64, tpu.core_type = #tpu.core_type<tc>} {
    %c0 = arith.constant 0 : index
    %c0_0 = arith.constant 0 : index
    %0 = vector.load %arg0[%c0, %c0_0] : memref<8x4xf32, #tpu.memory_space<vmem>>, vector<8x4xf32>
    %c4 = arith.constant 4 : index
    %c0_1 = arith.constant 0 : index
    %1 = vector.load %arg1[%c4, %c0_1] : memref<8x64xf32, #tpu.memory_space<vmem>>, vector<1x64xf32>
    %2 = vector.shape_cast %1 : vector<1x64xf32> to vector<1x64xf32>
    %3 = vector.broadcast %2 : vector<1x64xf32> to vector<8x64xf32>
    %4 = vector.extract_strided_slice %0 {offsets = [0, 0], sizes = [8, 1], strides = [1, 1]} : vector<8x4xf32> to vector<8x1xf32>
    %c0_2 = arith.constant 0 : index
    %c0_3 = arith.constant 0 : index
    %5 = vector.load %arg1[%c0_2, %c0_3] : memref<8x64xf32, #tpu.memory_space<vmem>>, vector<1x64xf32>
    %6 = vector.broadcast %4 : vector<8x1xf32> to vector<8x64xf32>
    %7 = vector.broadcast %5 : vector<1x64xf32> to vector<8x64xf32>
    %8 = arith.mulf %6, %7 : vector<8x64xf32>
    %9 = arith.addf %3, %8 : vector<8x64xf32>
    %10 = vector.extract_strided_slice %0 {offsets = [0, 1], sizes = [8, 1], strides = [1, 1]} : vector<8x4xf32> to vector<8x1xf32>
    %c1 = arith.constant 1 : index
    %c0_4 = arith.constant 0 : index
    %11 = vector.load %arg1[%c1, %c0_4] : memref<8x64xf32, #tpu.memory_space<vmem>>, vector<1x64xf32>
    %12 = vector.broadcast %10 : vector<8x1xf32> to vector<8x64xf32>
    %13 = vector.broadcast %11 : vector<1x64xf32> to vector<8x64xf32>
    %14 = arith.mulf %12, %13 : vector<8x64xf32>
    %15 = arith.addf %9, %14 : vector<8x64xf32>
    %16 = vector.extract_strided_slice %0 {offsets = [0, 2], sizes = [8, 1], strides = [1, 1]} : vector<8x4xf32> to vector<8x1xf32>
    %c2 = arith.constant 2 : index
    %c0_5 = arith.constant 0 : index
    %17 = vector.load %arg1[%c2, %c0_5] : memref<8x64xf32, #tpu.memory_space<vmem>>, vector<1x64xf32>
    %18 = vector.broadcast %16 : vector<8x1xf32> to vector<8x64xf32>
    %19 = vector.broadcast %17 : vector<1x64xf32> to vector<8x64xf32>
    %20 = arith.mulf %18, %19 : vector<8x64xf32>
    %21 = arith.addf %15, %20 : vector<8x64xf32>
    %22 = vector.extract_strided_slice %0 {offsets = [0, 3], sizes = [8, 1], strides = [1, 1]} : vector<8x4xf32> to vector<8x1xf32>
    %c3 = arith.constant 3 : index
    %c0_6 = arith.constant 0 : index
    %23 = vector.load %arg1[%c3, %c0_6] : memref<8x64xf32, #tpu.memory_space<vmem>>, vector<1x64xf32>
    %24 = vector.broadcast %22 : vector<8x1xf32> to vector<8x64xf32>
    %25 = vector.broadcast %23 : vector<1x64xf32> to vector<8x64xf32>
    %26 = arith.mulf %24, %25 : vector<8x64xf32>
    %27 = arith.addf %21, %26 : vector<8x64xf32>
    %cst = arith.constant 0.000000e+00 : f32
    %28 = vector.broadcast %cst : f32 to vector<8x64xf32>
    %29 = arith.maximumf %27, %28 : vector<8x64xf32>
    %cst_7 = arith.constant dense<0.000000e+00> : vector<64xf32>
    %30 = vector.multi_reduction <add>, %29, %cst_7 [0] : vector<8x64xf32> to vector<64xf32>
    %31 = vector.shape_cast %30 : vector<64xf32> to vector<1x64xf32>
    %cst_8 = arith.constant 8.000000e+00 : f32
    %32 = vector.broadcast %cst_8 : f32 to vector<1x64xf32>
    %33 = arith.divf %31, %32 : vector<1x64xf32>
    %34 = arith.mulf %29, %29 : vector<8x64xf32>
    %cst_9 = arith.constant dense<0.000000e+00> : vector<64xf32>
    %35 = vector.multi_reduction <add>, %34, %cst_9 [0] : vector<8x64xf32> to vector<64xf32>
    %36 = vector.shape_cast %35 : vector<64xf32> to vector<1x64xf32>
    %cst_10 = arith.constant 8.000000e+00 : f32
    %37 = vector.broadcast %cst_10 : f32 to vector<1x64xf32>
    %38 = arith.divf %36, %37 : vector<1x64xf32>
    %39 = arith.mulf %33, %33 : vector<1x64xf32>
    %40 = arith.subf %38, %39 : vector<1x64xf32>
    %41 = vector.broadcast %33 : vector<1x64xf32> to vector<8x64xf32>
    %42 = arith.subf %29, %41 : vector<8x64xf32>
    %cst_11 = arith.constant 9.99999974E-6 : f32
    %43 = vector.broadcast %cst_11 : f32 to vector<1x64xf32>
    %44 = arith.addf %40, %43 : vector<1x64xf32>
    %45 = math.rsqrt %44 : vector<1x64xf32>
    %46 = vector.broadcast %45 : vector<1x64xf32> to vector<8x64xf32>
    %47 = arith.mulf %42, %46 : vector<8x64xf32>
    %c5 = arith.constant 5 : index
    %c0_12 = arith.constant 0 : index
    %48 = vector.load %arg1[%c5, %c0_12] : memref<8x64xf32, #tpu.memory_space<vmem>>, vector<1x64xf32>
    %c6 = arith.constant 6 : index
    %c0_13 = arith.constant 0 : index
    %49 = vector.load %arg1[%c6, %c0_13] : memref<8x64xf32, #tpu.memory_space<vmem>>, vector<1x1xf32>
    %50 = vector.broadcast %48 : vector<1x64xf32> to vector<8x64xf32>
    %51 = arith.mulf %47, %50 : vector<8x64xf32>
    %cst_14 = arith.constant dense<0.000000e+00> : vector<8xf32>
    %52 = vector.multi_reduction <add>, %51, %cst_14 [1] : vector<8x64xf32> to vector<8xf32>
    %53 = vector.shape_cast %52 : vector<8xf32> to vector<8x1xf32>
    %54 = vector.broadcast %49 : vector<1x1xf32> to vector<8x1xf32>
    %55 = arith.addf %53, %54 : vector<8x1xf32>
    %c0_15 = arith.constant 0 : index
    %c0_16 = arith.constant 0 : index
    %56 = vector.load %arg2[%c0_15, %c0_16] : memref<8x1xf32, #tpu.memory_space<vmem>>, vector<8x1xf32>
    tpu.vector_store %arg2[%c0_15, %c0_16], %55 {strides = array<i32>} : memref<8x1xf32, #tpu.memory_space<vmem>>, vector<8x1xf32>,
    return
  }
}

</mosaic_0001>

<bundles_post_ra>
// kernel: tpu_custom_call.1
= control target key start
LH: loop header
LB: loop body
LE: loop exit
PB: predicated region body
PF: predicated region fallthrough
CT: control target
= control target key end

     0   :  { %v124_v0 = vmov 0   ;;  %v125_v2 = vmov 2   ;;  %v126_v3 = vmov 1   ;;  %v127_v4 = vmov 3   ;;  %s174_s0 = inlined_call_operand.vmem [shape: f32[8,4], index: 0, kind: input, shape index: {}]   ;;  %s175_s1 = inlined_call_operand.vmem [shape: f32[8,64], index: 1, kind: input, shape index: {}]   ;;  %s176_s2 = inlined_call_operand.vmem [shape: f32[8,1], index: 2, kind: output, shape index: {}]  }
   0x1   :  { %108 = vset.pattern.permute.xlu0 %v124_v0  ;;  %v11_v1 = vld [vmem:[%s174_s0] sm:$0xff]  ;;  %110 = vset.pattern.permute.xlu1 %v125_v2  ;;  %v128_v8 = vmov 8.0   ;;  %vm48_vm0 = vcmask 523264   ;;  %vm97_vm5 = vcmask 7168  }
   0x2   :  { %17 = vperm.xlu0 %108, %v11_v1   ;;  %33 = vperm.xlu1 %110, %v11_v1   ;;  %v114_v7 = vld [vmem:[%s175_s1] ss:$0 sm:$0xff]  ;;  %120 = vrcp.f32 %v128_v8  ;;  %v113_v9 = vld [vmem:[%s175_s1 + $0x4] ss:$0 sm:$0xff]  ;;  %v116_v11 = vld [vmem:[%s175_s1 + $0x1] ss:$0 sm:$0xff] }
   0x3   :  { %v115_v12 = vld [vmem:[%s175_s1 + $0x2] ss:$0 sm:$0xff]  ;;  %v117_v13 = vld [vmem:[%s175_s1 + $0x3] ss:$0 sm:$0xff]  ;;  %v118_v57 = vld [vmem:[%s175_s1 + $0x5] ss:$0 sm:$0xff] }
   0x4   :  { %v119_v62 = vld [vmem:[%s175_s1 + $0x6] ss:$0 sm:$0xff] }
   0x8   :  { %v121_v18 = vpop.eup %120 }
   0x9   :  { %v57_v23 = vmul.f32 8.0, %v121_v18  ;;  %vm61_vm1 = vweird.f32 %v121_v18 }
   0xa   :  { %109 = vset.pattern.permute.xlu0 %v126_v3  ;;  %111 = vset.pattern.permute.xlu1 %v127_v4 }
   0xb   :  { %25 = vperm.xlu0 %109, %v11_v1   ;;  %41 = vperm.xlu1 %111, %v11_v1   ;;  %v58_v26 = vsub.f32 1.0, %v57_v23 }
   0xd   :  { %v59_v30 = vmul.f32 %v121_v18, %v58_v26 }
   0xf   :  { %v60_v36 = vadd.f32 %v121_v18, %v59_v30 }
  0x11   :  { %v62_v41 = vsel %vm61_vm1, %v121_v18, %v60_v36 }
  0x13   :  { %112 = vset.pattern.permute.xlu0 %v127_v4 }
  0x74   :  { %v18_v5 = vpop.permute.xlu0 %17  ;;  %v34_v6 = vpop.permute.xlu1 %33 }
  0x75   :  { %v21_v10 = vmul.f32 %v114_v7, %v18_v5  ;;  %v37_v19 = vmul.f32 %v115_v12, %v34_v6 }
  0x77   :  { %v22_v16 = vadd.f32 %v113_v9, %v21_v10 }
  0x7d   :  { %v26_v14 = vpop.permute.xlu0 %25  ;;  %v42_v15 = vpop.permute.xlu1 %41 }
  0x7e   :  { %v29_v17 = vmul.f32 %v116_v11, %v26_v14  ;;  %v45_v21 = vmul.f32 %v117_v13, %v42_v15 }
  0x80   :  { %v30_v20 = vadd.f32 %v29_v17, %v22_v16 }
  0x82   :  { %v38_v22 = vadd.f32 %v37_v19, %v30_v20 }
  0x84   :  { %v46_v24 = vadd.f32 %v45_v21, %v38_v22 }
  0x86   :  { %v47_v25 = vmax.f32 %v46_v24, 0.0 }
  0x88   :  { %v49_v27 = vsel %vm48_vm0, %v47_v25, 0.0  ;;  %v64_v28 = vmul.f32 %v47_v25, %v47_v25 }
  0x89   :  { %v50_v29 = vrot.slane %v49_v27, 4 }
  0x8a   :  { %v65_v31 = vsel %vm48_vm0, %v64_v28, 0.0 }
  0x8b   :  { %v51_v32 = vadd.f32 %v50_v29, %v49_v27  ;;  %v66_v33 = vrot.slane %v65_v31, 4 }
  0x8d   :  { %v52_v34 = vrot.slane %v51_v32, 2  ;;  %v67_v35 = vadd.f32 %v66_v33, %v65_v31 }
  0x8f   :  { %v53_v37 = vadd.f32 %v52_v34, %v51_v32  ;;  %v68_v38 = vrot.slane %v67_v35, 2 }
  0x91   :  { %v54_v39 = vrot.slane %v53_v37, 1  ;;  %v69_v40 = vadd.f32 %v68_v38, %v67_v35 }
  0x93   :  { %v55_v42 = vadd.f32 %v54_v39, %v53_v37  ;;  %v70_v43 = vrot.slane %v69_v40, 1 }
  0x95   :  { %v63_v44 = vmul.f32 %v62_v41, %v55_v42  ;;  %v71_v45 = vadd.f32 %v70_v43, %v69_v40 }
  0x97   :  { %v72_v46 = vmul.f32 %v71_v45, %v62_v41  ;;  %v73_v47 = vmul.f32 %v63_v44, %v63_v44  ;;  %v75_v56 = vsub.f32 %v47_v25, %v63_v44 }
  0x99   :  { %v74_v48 = vsub.f32 %v72_v46, %v73_v47 }
  0x9b   :  { %v76_v49 = vadd.f32 1e-05, %v74_v48 }
  0x9d   :  { %122 = vrsqrt.f32 %v76_v49  ;;  %vm83_vm3 = vweird.f32 %v76_v49 }
  0xa3   :  { %v123_v50 = vpop.eup %122 }
  0xa4   :  { %v78_v51 = vmul.f32 %v123_v50, %v76_v49  ;;  %vm84_vm2 = vweird.f32 %v123_v50 }
  0xa5   :  { %vm85_vm4 = vmor %vm83_vm3, %vm84_vm2 }
  0xa6   :  { %v79_v52 = vmul.f32 %v123_v50, %v78_v51 }
  0xa8   :  { %v80_v53 = vmul.f32 0.5, %v79_v52 }
  0xaa   :  { %v81_v54 = vsub.f32 1.5, %v80_v53 }
  0xac   :  { %v82_v55 = vmul.f32 %v123_v50, %v81_v54 }
  0xae   :  { %v86_v58 = vsel %vm85_vm4, %v123_v50, %v82_v55 }
  0xaf   :  { %v87_v59 = vmul.f32 %v86_v58, %v75_v56 }
  0xb1   :  { %v91_v60 = vmul.f32 %v118_v57, %v87_v59 }
  0xb3   :  { %v92_v61 = vsel %vm48_vm0, %v91_v60, 0.0 }
  0xb4   :  { %93 = vadd.xlane.f32.xlu2 %v92_v61 }
 0x127   :  { %v94_v63 = vpop.xlane.xlu2 %93 }
 0x128   :  { %v96_v0 = vadd.f32 %v119_v62, %v94_v63 }
 0x12a   :  { %98 = vst.msk [vmem:[%s176_s2] sm:$0xff] %vm97_vm5, %v96_v0 }

</bundles_post_ra>
